<compile_context>
chip_gen: v5e
topology: v5e:2x2
jax: 0.10.0
libtpu: 0.0.40
codegen_flags: <defaults>
</compile_context>

<pallas_src>
import jax
import jax.numpy as jnp
from jax.experimental import pallas as pl
from jax.experimental.pallas import tpu as pltpu


def _round_up(n: int, m: int) -> int:
    return ((n + m - 1) // m) * m


# ---------------------------------------------------------------------------
# Kernel: three back-to-back (TM,P)@(P,P) matmuls, biases already folded into
# the weight slabs, relu/sigmoid on the VPU/EUP.  Single fused VMEM tile.
# ---------------------------------------------------------------------------
def meta_controller_kernel(x_ref, w_ref, o_ref):
    # fc1 + relu (bias folded; dropout = identity in eval mode)
    h = jnp.maximum(
        jnp.dot(x_ref[...], w_ref[0], preferred_element_type=jnp.float32), 0.0)
    # fc2 + relu (the "carry" column keeps a 1.0 alive for the next bias row)
    h = jnp.maximum(
        jnp.dot(h, w_ref[1], preferred_element_type=jnp.float32), 0.0)
    # fc3 + sigmoid, then 0.5 + x.  Padded lanes produce 1.0 and are sliced
    # off by the wrapper; the store itself is a full 128-lane unmasked vst.
    logits = jnp.dot(h, w_ref[2], preferred_element_type=jnp.float32)
    o_ref[...] = 0.5 + jax.nn.sigmoid(logits)


# ---------------------------------------------------------------------------
# Parameter packing: fold biases into weights, pad every dim to 128, stack
# the three layers into a single (3, P, P) slab -> one DMA instead of six.
# ---------------------------------------------------------------------------
def pack_params(params, input_size: int, hidden_size: int, out_size: int = 3):
    w1, b1, w2, b2, w3, b3 = params
    P = _round_up(max(input_size + 1, hidden_size + 1, out_size), 128)

    slab = jnp.zeros((3, P, P), jnp.float32)
    # layer 1: rows 0..in-1 = w1, row `input_size` = b1, carry 1 at col `hidden`
    slab = slab.at[0, :input_size, :hidden_size].set(w1)
    slab = slab.at[0, input_size, :hidden_size].set(b1[0])
    slab = slab.at[0, input_size, hidden_size].set(1.0)
    # layer 2: rows 0..h-1 = w2, row `hidden_size` = b2, carry 1 at col `hidden`
    slab = slab.at[1, :hidden_size, :hidden_size].set(w2)
    slab = slab.at[1, hidden_size, :hidden_size].set(b2[0])
    slab = slab.at[1, hidden_size, hidden_size].set(1.0)
    # layer 3: rows 0..h-1 = w3, row `hidden_size` = b3
    slab = slab.at[2, :hidden_size, :out_size].set(w3)
    slab = slab.at[2, hidden_size, :out_size].set(b3[0])
    return slab


# ---------------------------------------------------------------------------
# Wrapper: pad x (ones column + lane/sublane padding), run batched grid with
# resident weights, slice back to (B, 3).
# ---------------------------------------------------------------------------
def meta_controller_forward(x, packed_w, *, input_size: int, out_size: int = 3,
                            tm_max: int = 1024):
    B, in_dim = x.shape
    assert in_dim == input_size
    P = packed_w.shape[-1]

    # Augment with the constant-1 bias feature, then zero-pad to lane width P
    # and a sublane/grid-friendly batch.
    x_aug = jnp.concatenate([x, jnp.ones((B, 1), x.dtype)], axis=1)
    bp8 = _round_up(max(B, 1), 8)
    TM = bp8 if bp8 <= tm_max else tm_max          # rows per grid step
    Bp = _round_up(max(B, 1), TM)                  # padded batch
    x_pad = jnp.zeros((Bp, P), jnp.float32).at[:B, :in_dim + 1].set(x_aug)

    flops = 2 * Bp * P * P * 3                      # three (Bp,P)@(P,P) matmuls
    transcendentals = Bp * P                        # one exp per output lane
    bytes_accessed = 4 * (Bp * P + packed_w.size + Bp * P)

    out = pl.pallas_call(
        meta_controller_kernel,
        out_shape=jax.ShapeDtypeStruct((Bp, P), jnp.float32),
        grid_spec=pltpu.PrefetchScalarGridSpec(
            num_scalar_prefetch=0,
            grid=(Bp // TM,),
            in_specs=[
                pl.BlockSpec((TM, P), lambda i: (i, 0)),      # activations stream
                pl.BlockSpec((3, P, P), lambda i: (0, 0, 0)),  # weights resident
            ],
            out_specs=pl.BlockSpec((TM, P), lambda i: (i, 0)),
        ),
        compiler_params=pltpu.CompilerParams(
            dimension_semantics=("parallel",)),     # v7x: 2 TCs split the batch
        cost_estimate=pl.CostEstimate(
            flops=flops,
            transcendentals=transcendentals,
            bytes_accessed=bytes_accessed),
    )(x_pad, packed_w)

    return out[:B, :out_size]


# ---------------------------------------------------------------------------
# Init (nn.Linear-style uniform +-1/sqrt(fan_in)); weights stored (in, out).
# ---------------------------------------------------------------------------
def init_params(key, input_size=10, hidden_size=64, out_size=3):
    keys = jax.random.split(key, 6)

    def linear(kw, kb, fan_in, fan_out):
        bound = 1.0 / jnp.sqrt(jnp.float32(fan_in))
        w = jax.random.uniform(kw, (fan_in, fan_out), jnp.float32, -bound, bound)
        b = jax.random.uniform(kb, (1, fan_out), jnp.float32, -bound, bound)
        return w, b

    w1, b1 = linear(keys[0], keys[1], input_size, hidden_size)
    w2, b2 = linear(keys[2], keys[3], hidden_size, hidden_size)
    w3, b3 = linear(keys[4], keys[5], hidden_size, out_size)
    return (w1, b1, w2, b2, w3, b3)


def reference_forward(x, params):
    """Pure-JAX reference (eval mode: dropout = identity)."""
    w1, b1, w2, b2, w3, b3 = params
    h = jnp.maximum(x @ w1 + b1, 0.0)
    h = jnp.maximum(h @ w2 + b2, 0.0)
    return 0.5 + jax.nn.sigmoid(h @ w3 + b3)


if __name__ == "__main__":
    key = jax.random.PRNGKey(0)
    k_params, k_x = jax.random.split(key)

    input_size, hidden_size, batch = 10, 64, 2
    params = init_params(k_params, input_size, hidden_size)
    packed_w = pack_params(params, input_size, hidden_size)
    x = jax.random.normal(k_x, (batch, input_size), dtype=jnp.float32)

    out = meta_controller_forward(x, packed_w, input_size=input_size)
    out = jax.block_until_ready(out)

    ref = reference_forward(x, params)
    assert out.shape == (batch, 3), out.shape
    assert jnp.allclose(out, ref, atol=1e-5, rtol=1e-5), (out, ref)
    # outputs must lie in (0.5, 1.5) since they are 0.5 + sigmoid(.)
    assert bool(jnp.all(out > 0.5)) and bool(jnp.all(out < 1.5))

    # also exercise a larger batch to hit the multi-step grid path
    xb = jax.random.normal(jax.random.PRNGKey(1), (2048, input_size), jnp.float32)
    outb = jax.block_until_ready(
        meta_controller_forward(xb, packed_w, input_size=input_size))
    assert jnp.allclose(outb, reference_forward(xb, params), atol=1e-5, rtol=1e-5)

    print("KERNEL_OK")
</pallas_src>

<mosaic_0001>
module attributes {stable_mosaic.version = 11 : i64} {
  func.func @meta_controller_kernel(%arg0: i32, %arg1: memref<8x128xf32, #tpu.memory_space<vmem>>, %arg2: memref<3x128x128xf32, #tpu.memory_space<vmem>>, %arg3: memref<8x128xf32, #tpu.memory_space<vmem>>) attributes {dimension_semantics = [#tpu.dimension_semantics<parallel>], iteration_bounds = array<i64: 1>, scalar_prefetch = 0 : i64, scratch_operands = 0 : i64, tpu.core_type = #tpu.core_type<tc>, window_params = [{transform_indices = @transform_0, window_bounds = array<i64: 8, 128>}, {pipeline_mode = #tpu.pipeline_mode<synchronous>, transform_indices = @transform_1, window_bounds = array<i64: 3, 128, 128>}, {transform_indices = @transform_2, window_bounds = array<i64: 8, 128>}]} {
    %c0 = arith.constant 0 : index
    %c0_0 = arith.constant 0 : index
    %0 = vector.load %arg1[%c0, %c0_0] : memref<8x128xf32, #tpu.memory_space<vmem>>, vector<8x128xf32>
    %c0_1 = arith.constant 0 : index
    %c0_2 = arith.constant 0 : index
    %c0_3 = arith.constant 0 : index
    %1 = vector.load %arg2[%c0_1, %c0_2, %c0_3] : memref<3x128x128xf32, #tpu.memory_space<vmem>>, vector<1x128x128xf32>
    %2 = vector.shape_cast %1 : vector<1x128x128xf32> to vector<128x128xf32>
    %cst = arith.constant dense<0.000000e+00> : vector<8x128xf32>
    %3 = tpu.matmul %0, %2, %cst {dimension_numbers = #tpu.dot_dimension_numbers<[1], [0], [0], [1], [0, 0, 1, 1], [], []>} : vector<8x128xf32>, vector<128x128xf32>, vector<8x128xf32> -> vector<8x128xf32>
    %cst_4 = arith.constant 0.000000e+00 : f32
    %4 = vector.broadcast %cst_4 : f32 to vector<8x128xf32>
    %5 = arith.maximumf %3, %4 : vector<8x128xf32>
    %c1 = arith.constant 1 : index
    %c0_5 = arith.constant 0 : index
    %c0_6 = arith.constant 0 : index
    %6 = vector.load %arg2[%c1, %c0_5, %c0_6] : memref<3x128x128xf32, #tpu.memory_space<vmem>>, vector<1x128x128xf32>
    %7 = vector.shape_cast %6 : vector<1x128x128xf32> to vector<128x128xf32>
    %cst_7 = arith.constant dense<0.000000e+00> : vector<8x128xf32>
    %8 = tpu.matmul %5, %7, %cst_7 {dimension_numbers = #tpu.dot_dimension_numbers<[1], [0], [0], [1], [0, 0, 1, 1], [], []>} : vector<8x128xf32>, vector<128x128xf32>, vector<8x128xf32> -> vector<8x128xf32>
    %cst_8 = arith.constant 0.000000e+00 : f32
    %9 = vector.broadcast %cst_8 : f32 to vector<8x128xf32>
    %10 = arith.maximumf %8, %9 : vector<8x128xf32>
    %c2 = arith.constant 2 : index
    %c0_9 = arith.constant 0 : index
    %c0_10 = arith.constant 0 : index
    %11 = vector.load %arg2[%c2, %c0_9, %c0_10] : memref<3x128x128xf32, #tpu.memory_space<vmem>>, vector<1x128x128xf32>
    %12 = vector.shape_cast %11 : vector<1x128x128xf32> to vector<128x128xf32>
    %cst_11 = arith.constant dense<0.000000e+00> : vector<8x128xf32>
    %13 = tpu.matmul %10, %12, %cst_11 {dimension_numbers = #tpu.dot_dimension_numbers<[1], [0], [0], [1], [0, 0, 1, 1], [], []>} : vector<8x128xf32>, vector<128x128xf32>, vector<8x128xf32> -> vector<8x128xf32>
    %14 = arith.negf %13 : vector<8x128xf32>
    %15 = math.exp %14 : vector<8x128xf32>
    %cst_12 = arith.constant 1.000000e+00 : f32
    %16 = vector.broadcast %cst_12 : f32 to vector<8x128xf32>
    %17 = arith.addf %16, %15 : vector<8x128xf32>
    %18 = arith.divf %16, %17 : vector<8x128xf32>
    %cst_13 = arith.constant 5.000000e-01 : f32
    %19 = vector.broadcast %cst_13 : f32 to vector<8x128xf32>
    %20 = arith.addf %19, %18 : vector<8x128xf32>
    %c0_14 = arith.constant 0 : index
    %c0_15 = arith.constant 0 : index
    %21 = vector.load %arg3[%c0_14, %c0_15] : memref<8x128xf32, #tpu.memory_space<vmem>>, vector<8x128xf32>
    tpu.vector_store %arg3[%c0_14, %c0_15], %20 {strides = array<i32>} : memref<8x128xf32, #tpu.memory_space<vmem>>, vector<8x128xf32>,
    return
  }
  func.func @transform_0(%arg0: i32) -> (i32, i32) {
    %c0_i32 = arith.constant 0 : i32
    %c0_i32_0 = arith.constant 0 : i32
    return %arg0, %c0_i32 : i32, i32
  }
  func.func @transform_1(%arg0: i32) -> (i32, i32, i32) {
    %c0_i32 = arith.constant 0 : i32
    %c0_i32_0 = arith.constant 0 : i32
    %c0_i32_1 = arith.constant 0 : i32
    %c0_i32_2 = arith.constant 0 : i32
    return %c0_i32, %c0_i32_0, %c0_i32_1 : i32, i32, i32
  }
  func.func @transform_2(%arg0: i32) -> (i32, i32) {
    %c0_i32 = arith.constant 0 : i32
    %c0_i32_0 = arith.constant 0 : i32
    return %arg0, %c0_i32 : i32, i32
  }
}

</mosaic_0001>

<bundles_post_ra>
// kernel: tpu_custom_call.1
= control target key start
LH: loop header
LB: loop body
LE: loop exit
PB: predicated region body
PF: predicated region fallthrough
CT: control target
= control target key end

     0   :  { %7 = vsyncpa [#allocation3], 0  ;;  %s311_s0 = inlined_call_operand.hbm [shape: f32[8,128], index: 0, kind: input, shape index: {}]   ;;  %s312_s1 = inlined_call_operand.hbm [shape: f32[3,128,128], index: 1, kind: input, shape index: {}]   ;;  %s313_s2 = inlined_call_operand.hbm [shape: f32[8,128], index: 2, kind: output, shape index: {}]  }
   0x1   :  { %8 = vsyncpa [#allocation6], 0 }
   0x2   :  { %9 = vsyncpa [#allocation4], 0  ;;  %s15_s11 = sshll.u32 %s311_s0, 4  ;;  %s282_s12 = smov [#allocation2]   ;;  %s16_s11 = int_to_ptr.hbm [resolvable:$true] %s15_s11 }
   0x3   :  { %s17_s13 = sshll.u32 %s282_s12, 4  ;;  %s25_s16 = sshll.u32 %s312_s1, 4  ;;  %s18_s13 = int_to_ptr.vmem [resolvable:$true] %s17_s13  ;;  %s26_s16 = int_to_ptr.hbm [resolvable:$true] %s25_s16 }
   0x4   :  { %20 = dma.hbm_to_vmem [thread:$0]  %s16_s11, 128, %s18_s13, [#allocation3]  }
   0x5   :  { %s283_s17 = smov [#allocation5]   ;;  %s284_s19 = smov 128  }
   0x6   :  { %s27_s18 = sshll.u32 %s283_s17, 4  ;;  %s285_s20 = smov 8   ;;  %s28_s18 = int_to_ptr.vmem [resolvable:$true] %s27_s18 }
   0x7   :  { %33 = dma.hbm_to_vmem [thread:$0]  %s26_s16, 6144, %s28_s18, [#allocation6], %s284_s19, %s284_s19, %s285_s20  }
   0x8   :  { %276 = dma.done.wait [#allocation3], 128  }
   0x9   :  { %277 = vsyncadd [#allocation3], 4294967168 }
   0xa   :  { %278 = dma.done.wait [#allocation6], 6144  }
   0xb   :  { %279 = vsyncadd [#allocation6], 4294961152  ;;  %v58_v0 = vld [vmem:[#allocation5 + $0x78] sm:$0xff]  ;;  %v57_v1 = vld [vmem:[#allocation5 + $0x70] sm:$0xff]  ;;  %s286_s0 = smov [#allocation7]   ;;  %s183_s23 = sshll.u32 %s313_s2, 4  ;;  %s184_s23 = int_to_ptr.hbm [resolvable:$true] %s183_s23 }
   0xc   :  { %59 = vmatpush.msra.mxu0 %v58_v0  ;;  %v56_v2 = vld [vmem:[#allocation5 + $0x68] sm:$0xff]  ;;  %v55_v3 = vld [vmem:[#allocation5 + $0x60] sm:$0xff]  ;;  %v96_v4 = vld [vmem:[#allocation5 + $0xf8] sm:$0xff]  ;;  %s181_s1 = sshll.u32 %s286_s0, 4  ;;  %s182_s1 = int_to_ptr.vmem [resolvable:$true] %s181_s1 }
   0xd   :  { %v54_v5 = vld [vmem:[#allocation5 + $0x58] sm:$0xff]  ;;  %97 = vmatpush.msra.mxu1 %v96_v4  ;;  %v95_v6 = vld [vmem:[#allocation5 + $0xf0] sm:$0xff]  ;;  %v94_v7 = vld [vmem:[#allocation5 + $0xe8] sm:$0xff] }
   0xe   :  { %60 = vmatpush.msra.mxu0 %v57_v1  ;;  %v53_v8 = vld [vmem:[#allocation5 + $0x50] sm:$0xff]  ;;  %v93_v9 = vld [vmem:[#allocation5 + $0xe0] sm:$0xff]  ;;  %v52_v10 = vld [vmem:[#allocation5 + $0x48] sm:$0xff] }
   0xf   :  { %98 = vmatpush.msra.mxu1 %v95_v6  ;;  %v92_v11 = vld [vmem:[#allocation5 + $0xd8] sm:$0xff]  ;;  %v51_v12 = vld [vmem:[#allocation5 + $0x40] sm:$0xff]  ;;  %v91_v13 = vld [vmem:[#allocation5 + $0xd0] sm:$0xff] }
  0x10   :  { %61 = vmatpush.msra.mxu0 %v56_v2  ;;  %v50_v14 = vld [vmem:[#allocation5 + $0x38] sm:$0xff]  ;;  %v90_v15 = vld [vmem:[#allocation5 + $0xc8] sm:$0xff]  ;;  %v49_v16 = vld [vmem:[#allocation5 + $0x30] sm:$0xff] }
  0x11   :  { %99 = vmatpush.msra.mxu1 %v94_v7  ;;  %v89_v17 = vld [vmem:[#allocation5 + $0xc0] sm:$0xff]  ;;  %v48_v18 = vld [vmem:[#allocation5 + $0x28] sm:$0xff]  ;;  %v88_v19 = vld [vmem:[#allocation5 + $0xb8] sm:$0xff] }
  0x12   :  { %62 = vmatpush.msra.mxu0 %v55_v3  ;;  %v47_v20 = vld [vmem:[#allocation5 + $0x20] sm:$0xff]  ;;  %v87_v21 = vld [vmem:[#allocation5 + $0xb0] sm:$0xff]  ;;  %v46_v22 = vld [vmem:[#allocation5 + $0x18] sm:$0xff] }
  0x13   :  { %100 = vmatpush.msra.mxu1 %v93_v9  ;;  %v86_v23 = vld [vmem:[#allocation5 + $0xa8] sm:$0xff]  ;;  %v45_v24 = vld [vmem:[#allocation5 + $0x10] sm:$0xff]  ;;  %v85_v25 = vld [vmem:[#allocation5 + $0xa0] sm:$0xff] }
  0x14   :  { %63 = vmatpush.msra.mxu0 %v54_v5  ;;  %v44_v26 = vld [vmem:[#allocation5 + $0x8] sm:$0xff]  ;;  %v84_v27 = vld [vmem:[#allocation5 + $0x98] sm:$0xff]  ;;  %v43_v28 = vld [vmem:[#allocation5] sm:$0xff] }
  0x15   :  { %101 = vmatpush.msra.mxu1 %v92_v11  ;;  %v42_v29 = vld [vmem:[#allocation2] sm:$0xff]  ;;  %v83_v30 = vld [vmem:[#allocation5 + $0x90] sm:$0xff]  ;;  %v82_v31 = vld [vmem:[#allocation5 + $0x88] sm:$0xff] }
  0x16   :  { %64 = vmatpush.msra.mxu0 %v53_v8  ;;  %v81_v32 = vld [vmem:[#allocation5 + $0x80] sm:$0xff]  ;;  %v134_v33 = vld [vmem:[#allocation5 + $0x178] sm:$0xff]  ;;  %v133_v34 = vld [vmem:[#allocation5 + $0x170] sm:$0xff] }
  0x17   :  { %102 = vmatpush.msra.mxu1 %v91_v13  ;;  %135 = vmatpush.msra.mxu2 %v134_v33  ;;  %v132_v35 = vld [vmem:[#allocation5 + $0x168] sm:$0xff]  ;;  %v131_v36 = vld [vmem:[#allocation5 + $0x160] sm:$0xff]  ;;  %v130_v37 = vld [vmem:[#allocation5 + $0x158] sm:$0xff] }
  0x18   :  { %65 = vmatpush.msra.mxu0 %v52_v10  ;;  %v129_v38 = vld [vmem:[#allocation5 + $0x150] sm:$0xff]  ;;  %v128_v39 = vld [vmem:[#allocation5 + $0x148] sm:$0xff]  ;;  %v127_v40 = vld [vmem:[#allocation5 + $0x140] sm:$0xff] }
  0x19   :  { %103 = vmatpush.msra.mxu1 %v90_v15  ;;  %136 = vmatpush.msra.mxu2 %v133_v34  ;;  %v126_v41 = vld [vmem:[#allocation5 + $0x138] sm:$0xff]  ;;  %v125_v42 = vld [vmem:[#allocation5 + $0x130] sm:$0xff]  ;;  %v124_v43 = vld [vmem:[#allocation5 + $0x128] sm:$0xff] }
  0x1a   :  { %66 = vmatpush.msra.mxu0 %v51_v12  ;;  %v123_v44 = vld [vmem:[#allocation5 + $0x120] sm:$0xff]  ;;  %v122_v45 = vld [vmem:[#allocation5 + $0x118] sm:$0xff]  ;;  %v121_v46 = vld [vmem:[#allocation5 + $0x110] sm:$0xff] }
  0x1b   :  { %104 = vmatpush.msra.mxu1 %v89_v17  ;;  %137 = vmatpush.msra.mxu2 %v132_v35  ;;  %v120_v49 = vld [vmem:[#allocation5 + $0x108] sm:$0xff]  ;;  %v119_v50 = vld [vmem:[#allocation5 + $0x100] sm:$0xff] }
  0x1c   :  { %67 = vmatpush.msra.mxu0 %v50_v14 }
  0x1d   :  { %105 = vmatpush.msra.mxu1 %v88_v19  ;;  %138 = vmatpush.msra.mxu2 %v131_v36 }
  0x1e   :  { %68 = vmatpush.msra.mxu0 %v49_v16 }
  0x1f   :  { %106 = vmatpush.msra.mxu1 %v87_v21  ;;  %139 = vmatpush.msra.mxu2 %v130_v37 }
  0x20   :  { %69 = vmatpush.msra.mxu0 %v48_v18 }
  0x21   :  { %107 = vmatpush.msra.mxu1 %v86_v23  ;;  %140 = vmatpush.msra.mxu2 %v129_v38 }
  0x22   :  { %70 = vmatpush.msra.mxu0 %v47_v20 }
  0x23   :  { %108 = vmatpush.msra.mxu1 %v85_v25  ;;  %141 = vmatpush.msra.mxu2 %v128_v39 }
  0x24   :  { %71 = vmatpush.msra.mxu0 %v46_v22 }
  0x25   :  { %109 = vmatpush.msra.mxu1 %v84_v27  ;;  %142 = vmatpush.msra.mxu2 %v127_v40 }
  0x26   :  { %72 = vmatpush.msra.mxu0 %v45_v24 }
  0x27   :  { %110 = vmatpush.msra.mxu1 %v83_v30  ;;  %143 = vmatpush.msra.mxu2 %v126_v41 }
  0x28   :  { %73 = vmatpush.msra.mxu0 %v44_v26 }
  0x29   :  { %111 = vmatpush.msra.mxu1 %v82_v31  ;;  %144 = vmatpush.msra.mxu2 %v125_v42 }
  0x2a   :  { %74 = vmatpush.msra.mxu0 %v43_v28 }
  0x2b   :  { %75 = vmatmul.f32.vlgmr.msra.gmra.mxu0 %v42_v29  ;;  %112 = vmatpush.msra.mxu1 %v81_v32 }
  0x2c   :  { %145 = vmatpush.msra.mxu2 %v124_v43 }
  0x2e   :  { %146 = vmatpush.msra.mxu2 %v123_v44 }
  0x30   :  { %147 = vmatpush.msra.mxu2 %v122_v45 }
  0x32   :  { %148 = vmatpush.msra.mxu2 %v121_v46 }
  0x34   :  { %149 = vmatpush.msra.mxu2 %v120_v49 }
  0x36   :  { %150 = vmatpush.msra.mxu2 %v119_v50 }
  0xa8   :  { %v76_v47 = vpop.f32.mrf.mxu0 }
  0xa9   :  { %v79_v48 = vmax.f32 %v76_v47, 0.0 }
  0xab   :  { %113 = vmatmul.f32.vlgmr.msra.gmra.mxu1 %v79_v48 }
 0x128   :  { %v114_v51 = vpop.f32.mrf.mxu1 }
 0x129   :  { %v117_v52 = vmax.f32 %v114_v51, 0.0 }
 0x12b   :  { %151 = vmatmul.f32.vlgmr.msra.gmra.mxu2 %v117_v52 }
 0x1ae   :  { %v152_v53 = vpop.f32.mrf.mxu2 }
 0x1af   :  { %v194_v54 = vmul.f32 -1.442695, %v152_v53 }
 0x1b1   :  { %200 = vpow2.f32 %v194_v54 }
 0x1b7   :  { %v201_v55 = vpop.eup %200 }
 0x1b8   :  { %v158_v56 = vadd.f32 1.0, %v201_v55 }
 0x1ba   :  { %202 = vrcp.f32 %v158_v56  ;;  %v170_v60 = vand.u32 2147483648, %v158_v56  ;;  %v168_v62 = vand.u32 2147483647, %v158_v56  ;;  %vm164_vm1 = vweird.f32 %v158_v56 }
 0x1bc   :  { %v171_v0 = vor.u32 1.1754944e-38, %v170_v60  ;;  %vm169_vm3 = vcmp.eq.f32.partialorder %v168_v62, 8.507059e+37 }
 0x1c0   :  { %v203_v57 = vpop.eup %202 }
 0x1c1   :  { %v160_v58 = vmul.f32 %v203_v57, %v158_v56  ;;  %vm165_vm0 = vweird.f32 %v203_v57 }
 0x1c2   :  { %vm166_vm2 = vmor %vm164_vm1, %vm165_vm0 }
 0x1c3   :  { %v161_v59 = vsub.f32 1.0, %v160_v58 }
 0x1c5   :  { %v162_v61 = vmul.f32 %v203_v57, %v161_v59 }
 0x1c7   :  { %v163_v63 = vadd.f32 %v203_v57, %v162_v61 }
 0x1c9   :  { %v167_v1 = vsel %vm166_vm2, %v203_v57, %v163_v63 }
 0x1ca   :  { %v172_v2 = vsel %vm169_vm3, %v171_v0, %v167_v1 }
 0x1cb   :  { %v174_v3 = vadd.f32 0.5, %v172_v2 }
 0x1cd   :  { %175 = vst [vmem:[#allocation7] sm:$0xff] %v174_v3 }
 0x1ce   :  { %186 = dma.vmem_to_hbm [thread:$0]  %s182_s1, 128, %s184_s23, [#allocation4]  }
 0x1cf   :  { %280 = dma.done.wait [#allocation4], 128  }
 0x1d0   :  { %281 = vsyncadd [#allocation4], 4294967168 }
 0x1d1   :  { %191 = vsyncpa [#allocation3], 1 }
 0x1d2   :  { %192 = vsyncpa [#allocation6], 1 }
 0x1d3   :  { %193 = vsyncpa [#allocation4], 1 }

</bundles_post_ra>
